<compile_context>
chip_gen: v7x
topology: tpu7x:2x2x1
jax: 0.10.0
libtpu: 0.0.40
codegen_flags: <defaults>
</compile_context>

<pallas_src>
import functools

import jax
import jax.numpy as jnp
from jax.experimental import pallas as pl
from jax.experimental.pallas import tpu as pltpu


def _relu_conv1x1_sigmoid_kernel(w_ref, x_ref, b_ref, o_ref):
    # w_ref: (Cout, Cin)      resident conv weight (bf16 or f32)
    # x_ref: (Cin, tile_hw)   streamed activation tile (channels on sublanes)
    # b_ref: (Cout, 1)        resident bias (f32)
    # o_ref: (Cout, tile_hw)  output tile (lane-dense along HW)
    x = jnp.maximum(x_ref[...], 0.0)                        # ReLU (VPU)
    y = jnp.dot(w_ref[...], x,
                preferred_element_type=jnp.float32)         # 1x1 conv (MXU), f32 acc
    y = y + b_ref[...]                                      # bias, broadcast over lanes
    # sigmoid(y) = 0.5 * (tanh(y/2) + 1): one EUP transcendental, numerically stable.
    o_ref[...] = (0.5 * (jnp.tanh(0.5 * y) + 1.0)).astype(o_ref.dtype)


def _reference(x, weight, bias):
    Cout, Cin = weight.shape[0], weight.shape[1]
    y = jnp.einsum("nchw,oc->nohw", jnp.maximum(x, 0.0), weight.reshape(Cout, Cin))
    return jax.nn.sigmoid(y + bias.reshape(1, Cout, 1, 1))


@functools.partial(
    jax.jit, static_argnames=("tile_hw_max", "cast_bf16", "small_fallback"))
def relu_conv1x1_sigmoid(x_nchw, weight, bias, *, tile_hw_max=4096,
                         cast_bf16=True, small_fallback=False):
    """x_nchw: (N, Cin, H, W); weight: (Cout, Cin, 1, 1); bias: (Cout,)."""
    N, Cin, H, W = x_nchw.shape
    Cout = weight.shape[0]
    HW = H * W

    # Tiny production shape: launch + DMA latency dominates; let XLA fuse it.
    if small_fallback and N * HW <= 128:
        return _reference(x_nchw, weight, bias)

    in_dtype = jnp.bfloat16 if cast_bf16 else jnp.float32

    # Copy-free reshapes: channels stay on sublanes, HW on lanes.
    x_flat = x_nchw.reshape(N, Cin, HW).astype(in_dtype)
    w_mat = weight.reshape(Cout, Cin).astype(in_dtype)
    b_mat = bias.reshape(Cout, 1).astype(jnp.float32)

    # Lane tile over HW: a multiple of 128 (ragged last block handled by Pallas
    # masked stores) or the full HW if small.  When N == 1 ensure >= 2 grid
    # steps so v7x's two TensorCores both get a share of the stream.
    if HW <= 128:
        tile_hw = HW
    else:
        tile_hw = max(128, min(tile_hw_max, (HW // 128) * 128))
        if N == 1:
            half = ((-(-HW // 2) + 127) // 128) * 128   # round_up(cdiv(HW,2), 128)
            if half < tile_hw:
                tile_hw = half
    grid = (N, pl.cdiv(HW, tile_hw))

    itemsize_in = jnp.dtype(in_dtype).itemsize
    cost = pl.CostEstimate(
        flops=2 * Cout * Cin * N * HW,
        transcendentals=Cout * N * HW,
        bytes_accessed=(N * Cin * HW * itemsize_in        # x
                        + Cout * Cin * itemsize_in        # weight
                        + Cout * 4                        # bias
                        + N * Cout * HW * 4),             # output (f32)
    )

    out = pl.pallas_call(
        _relu_conv1x1_sigmoid_kernel,
        out_shape=jax.ShapeDtypeStruct((N, Cout, HW), jnp.float32),
        grid_spec=pltpu.PrefetchScalarGridSpec(
            num_scalar_prefetch=0,
            grid=grid,
            in_specs=[
                pl.BlockSpec((Cout, Cin), lambda n, i: (0, 0)),        # resident weight
                pl.BlockSpec((pl.Squeezed(), Cin, tile_hw),
                             lambda n, i: (n, 0, i)),                  # streamed x
                pl.BlockSpec((Cout, 1), lambda n, i: (0, 0)),          # resident bias
            ],
            out_specs=pl.BlockSpec((pl.Squeezed(), Cout, tile_hw),
                                   lambda n, i: (n, 0, i)),
        ),
        compiler_params=pltpu.CompilerParams(
            dimension_semantics=("parallel", "parallel"),
        ),
        cost_estimate=cost,
    )(w_mat, x_flat, b_mat)

    return out.reshape(N, Cout, H, W)   # pure reshape, no copy


if __name__ == "__main__":
    key = jax.random.PRNGKey(0)
    k_x, k_w, k_b, k_x2, k_x3 = jax.random.split(key, 5)

    Cin, Cout = 80, 320
    bound = 1.0 / (Cin ** 0.5)
    weight = jax.random.uniform(k_w, (Cout, Cin, 1, 1), jnp.float32, -bound, bound)
    bias = jax.random.uniform(k_b, (Cout,), jnp.float32, -bound, bound)

    # Case 1: the module's actual shape [1, 80, 1, 1] (single tiny block, bf16 path).
    x1 = jax.random.normal(k_x, (1, Cin, 1, 1), dtype=jnp.float32)
    out1 = jax.block_until_ready(relu_conv1x1_sigmoid(x1, weight, bias))
    ref1 = _reference(x1, weight, bias)
    assert out1.shape == (1, Cout, 1, 1), out1.shape
    assert jnp.allclose(out1, ref1, atol=1e-2), "mismatch vs reference (case 1, bf16)"

    # Case 2: batched + spatial (squeezed-batch 2-D grid), exact f32 path.
    x2 = jax.random.normal(k_x2, (2, Cin, 16, 16), dtype=jnp.float32)
    out2 = jax.block_until_ready(
        relu_conv1x1_sigmoid(x2, weight, bias, cast_bf16=False))
    ref2 = _reference(x2, weight, bias)
    assert out2.shape == (2, Cout, 16, 16), out2.shape
    assert jnp.allclose(out2, ref2, atol=1e-5, rtol=1e-5), "mismatch (case 2, f32)"

    # Case 2b: same shape via the default bf16-I/O path.
    out2b = jax.block_until_ready(relu_conv1x1_sigmoid(x2, weight, bias))
    assert jnp.allclose(out2b, ref2, atol=1e-2), "mismatch (case 2b, bf16)"

    # Case 3: ragged spatial dim (HW=324 -> 2 HW blocks, masked tail), f32 path.
    x3 = jax.random.normal(k_x3, (1, Cin, 18, 18), dtype=jnp.float32)
    out3 = jax.block_until_ready(
        relu_conv1x1_sigmoid(x3, weight, bias, cast_bf16=False))
    ref3 = _reference(x3, weight, bias)
    assert out3.shape == (1, Cout, 18, 18), out3.shape
    assert jnp.allclose(out3, ref3, atol=1e-5, rtol=1e-5), "mismatch (case 3, ragged)"

    print("KERNEL_OK")
</pallas_src>

<mosaic_0001>
module attributes {stable_mosaic.version = 11 : i64} {
  func.func @_relu_conv1x1_sigmoid_kernel(%arg0: i32, %arg1: i32, %arg2: memref<320x80xbf16, #tpu.memory_space<vmem>>, %arg3: memref<1x80x1xbf16, #tpu.memory_space<vmem>>, %arg4: memref<320x1xf32, #tpu.memory_space<vmem>>, %arg5: memref<1x320x1xf32, #tpu.memory_space<vmem>>) attributes {dimension_semantics = [#tpu.dimension_semantics<parallel>, #tpu.dimension_semantics<parallel>], iteration_bounds = array<i64: 1, 1>, scalar_prefetch = 0 : i64, scratch_operands = 0 : i64, tpu.core_type = #tpu.core_type<tc>, window_params = [{pipeline_mode = #tpu.pipeline_mode<synchronous>, transform_indices = @transform_0, window_bounds = array<i64: 320, 80>}, {transform_indices = @transform_1, window_bounds = array<i64: 1, 80, 1>}, {pipeline_mode = #tpu.pipeline_mode<synchronous>, transform_indices = @transform_2, window_bounds = array<i64: 320, 1>}, {transform_indices = @transform_3, window_bounds = array<i64: 1, 320, 1>}]} {
    %c0 = arith.constant 0 : index
    %c0_0 = arith.constant 0 : index
    %c0_1 = arith.constant 0 : index
    %0 = vector.load %arg3[%c0, %c0_0, %c0_1] : memref<1x80x1xbf16, #tpu.memory_space<vmem>>, vector<1x80x1xbf16>
    %1 = vector.shape_cast %0 : vector<1x80x1xbf16> to vector<80x1xbf16>
    %cst = arith.constant 0.000000e+00 : bf16
    %2 = vector.broadcast %cst : bf16 to vector<80x1xbf16>
    %3 = arith.maximumf %1, %2 : vector<80x1xbf16>
    %c0_2 = arith.constant 0 : index
    %c0_3 = arith.constant 0 : index
    %4 = vector.load %arg2[%c0_2, %c0_3] : memref<320x80xbf16, #tpu.memory_space<vmem>>, vector<320x80xbf16>
    %cst_4 = arith.constant dense<0.000000e+00> : vector<320x1xf32>
    %5 = tpu.matmul %4, %3, %cst_4 {dimension_numbers = #tpu.dot_dimension_numbers<[1], [0], [0], [1], [0, 0, 1, 1], [], []>} : vector<320x80xbf16>, vector<80x1xbf16>, vector<320x1xf32> -> vector<320x1xf32>
    %c0_5 = arith.constant 0 : index
    %c0_6 = arith.constant 0 : index
    %6 = vector.load %arg4[%c0_5, %c0_6] : memref<320x1xf32, #tpu.memory_space<vmem>>, vector<320x1xf32>
    %7 = arith.addf %5, %6 : vector<320x1xf32>
    %cst_7 = arith.constant 5.000000e-01 : f32
    %8 = vector.broadcast %cst_7 : f32 to vector<320x1xf32>
    %9 = arith.mulf %8, %7 : vector<320x1xf32>
    %10 = math.tanh %9 : vector<320x1xf32>
    %cst_8 = arith.constant 1.000000e+00 : f32
    %11 = vector.broadcast %cst_8 : f32 to vector<320x1xf32>
    %12 = arith.addf %10, %11 : vector<320x1xf32>
    %cst_9 = arith.constant 5.000000e-01 : f32
    %13 = vector.broadcast %cst_9 : f32 to vector<320x1xf32>
    %14 = arith.mulf %13, %12 : vector<320x1xf32>
    %c0_10 = arith.constant 0 : index
    %c0_11 = arith.constant 0 : index
    %c0_12 = arith.constant 0 : index
    %15 = vector.load %arg5[%c0_10, %c0_11, %c0_12] : memref<1x320x1xf32, #tpu.memory_space<vmem>>, vector<1x320x1xf32>
    %16 = vector.shape_cast %15 : vector<1x320x1xf32> to vector<320x1xf32>
    %17 = vector.shape_cast %14 : vector<320x1xf32> to vector<1x320x1xf32>
    tpu.vector_store %arg5[%c0_10, %c0_11, %c0_12], %17 {strides = array<i32>} : memref<1x320x1xf32, #tpu.memory_space<vmem>>, vector<1x320x1xf32>,
    return
  }
  func.func @transform_0(%arg0: i32, %arg1: i32) -> (i32, i32) {
    %c0_i32 = arith.constant 0 : i32
    %c0_i32_0 = arith.constant 0 : i32
    %c0_i32_1 = arith.constant 0 : i32
    return %c0_i32, %c0_i32_0 : i32, i32
  }
  func.func @transform_1(%arg0: i32, %arg1: i32) -> (i32, i32, i32) {
    %c0_i32 = arith.constant 0 : i32
    %c0_i32_0 = arith.constant 0 : i32
    return %arg0, %c0_i32, %arg1 : i32, i32, i32
  }
  func.func @transform_2(%arg0: i32, %arg1: i32) -> (i32, i32) {
    %c0_i32 = arith.constant 0 : i32
    %c0_i32_0 = arith.constant 0 : i32
    %c0_i32_1 = arith.constant 0 : i32
    return %c0_i32, %c0_i32_0 : i32, i32
  }
  func.func @transform_3(%arg0: i32, %arg1: i32) -> (i32, i32, i32) {
    %c0_i32 = arith.constant 0 : i32
    %c0_i32_0 = arith.constant 0 : i32
    return %arg0, %c0_i32, %arg1 : i32, i32, i32
  }
}

</mosaic_0001>

<bundles_post_ra>
// kernel: relu_conv1x1_sigmoid.1
= control target key start
LH: loop header
LB: loop body
LE: loop exit
PB: predicated region body
PF: predicated region fallthrough
CT: control target
= control target key end

     0   :  { %v935_v3 = vmov 0   ;;  %vm245_vm0 = vcmask 654336   ;;  %vm659_vm1 = vcmask 7168   ;;  %s1373_s1 = inlined_call_operand.vmem [shape: bf16[1,80,1], index: 1, kind: input, shape index: {}]   ;;  %s1374_s0 = inlined_call_operand.vmem [shape: bf16[320,80], index: 0, kind: input, shape index: {}]   ;;  %s1375_s2 = inlined_call_operand.vmem [shape: f32[320,1], index: 2, kind: input, shape index: {}]   ;;  %s1376_s3 = inlined_call_operand.vmem [shape: f32[1,320,1], index: 3, kind: output, shape index: {}]  }
   0x1   :  { %v15_v0 = vld [vmem:[%s1373_s1] sm:$0xf]  ;;  %v16_v1 = vld [vmem:[%s1373_s1 + $0x4] sm:$0xf]  ;;  %v17_v2 = vld [vmem:[%s1373_s1 + $0x8] sm:$0xf] }
   0x2   :  { %v25_v4 = vmax.bf16 %v935_v3, %v15_v0  ;;  %v26_v5 = vmax.bf16 %v935_v3, %v16_v1  ;;  %v18_v6 = vld [vmem:[%s1373_s1 + $0xc] sm:$0xf]  ;;  %v27_v7 = vmax.bf16 %v935_v3, %v17_v2  ;;  %v19_v8 = vld [vmem:[%s1373_s1 + $0x10] sm:$0xf]  ;;  %v20_v9 = vld [vmem:[%s1373_s1 + $0x14] sm:$0xf] }
   0x3   :  { %v28_v10 = vmax.bf16 %v935_v3, %v18_v6  ;;  %v21_v11 = vld [vmem:[%s1373_s1 + $0x18] sm:$0xf]  ;;  %v29_v13 = vmax.bf16 %v935_v3, %v19_v8  ;;  %v30_v14 = vmax.bf16 %v935_v3, %v20_v9  ;;  %v22_v15 = vld [vmem:[%s1373_s1 + $0x1c] sm:$0xf]  ;;  %v835_v17 = vld [vmem:[%s1374_s0] sm:$0xff]  }
   0x4   :  { %v724_v12 = vcombine.low %v25_v4, %v26_v5  ;;  %v836_v18 = vld [vmem:[%s1374_s0 + $0x50] sm:$0xff]   ;;  %v31_v20 = vmax.bf16 %v935_v3, %v21_v11  ;;  %v32_v21 = vmax.bf16 %v935_v3, %v22_v15  ;;  %v23_v22 = vld [vmem:[%s1373_s1 + $0x20] sm:$0xf]  ;;  %v24_v23 = vld [vmem:[%s1373_s1 + $0x24] sm:$0xf]  ;;  %784 = vmatprep.mubr.msk.bf16.mxu0 %vm245_vm0, %v835_v17 }
   0x5   :  { %v725_v16 = vcombine.low %v27_v7, %v28_v10  ;;  %v726_v19 = vcombine.low %v29_v13, %v30_v14  ;;  %804 = vmatprep.mubr.msk.bf16.mxu1 %vm245_vm0, %v836_v18  ;;  %v33_v25 = vmax.bf16 %v935_v3, %v23_v22  ;;  %v34_v26 = vmax.bf16 %v935_v3, %v24_v23  ;;  %v837_v28 = vld [vmem:[%s1374_s0 + $0x8] sm:$0xff]   ;;  %v838_v29 = vld [vmem:[%s1374_s0 + $0x58] sm:$0xff]   ;;  %v839_v30 = vld [vmem:[%s1374_s0 + $0x10] sm:$0xff]  }
   0x6   :  { %774 = vmatprep.subr.bf16.mxu0 %v724_v12  ;;  %824 = vmatprep.subr.bf16.mxu1 %v724_v12  ;;  %v727_v24 = vcombine.low %v31_v20, %v32_v21  ;;  %v840_v31 = vld [vmem:[%s1374_s0 + $0x60] sm:$0xff]   ;;  %v841_v32 = vld [vmem:[%s1374_s0 + $0x18] sm:$0xff]   ;;  %v842_v33 = vld [vmem:[%s1374_s0 + $0x68] sm:$0xff]  }
   0x7   :  { %775 = vmatpush3.bf16.msra.mxu0 %v724_v12  ;;  %829 = vmatpush3.bf16.msra.mxu1 %v724_v12  ;;  %v728_v27 = vcombine.low %v33_v25, %v34_v26  ;;  %v843_v34 = vld [vmem:[%s1374_s0 + $0x20] sm:$0xff]   ;;  %v844_v35 = vld [vmem:[%s1374_s0 + $0x70] sm:$0xff]   ;;  %v845_v36 = vld [vmem:[%s1374_s0 + $0x28] sm:$0xff]  }
   0x8   :  { %776 = vmatprep.subr.bf16.mxu0 %v725_v16  ;;  %825 = vmatprep.subr.bf16.mxu1 %v725_v16  ;;  %v846_v37 = vld [vmem:[%s1374_s0 + $0x78] sm:$0xff]   ;;  %v847_v38 = vld [vmem:[%s1374_s0 + $0x30] sm:$0xff]   ;;  %v848_v39 = vld [vmem:[%s1374_s0 + $0x80] sm:$0xff]  }
   0x9   :  { %v849_v40 = vld [vmem:[%s1374_s0 + $0x38] sm:$0xff]   ;;  %v850_v41 = vld [vmem:[%s1374_s0 + $0x88] sm:$0xff]   ;;  %v851_v42 = vld [vmem:[%s1374_s0 + $0x40] sm:$0xff]  }
   0xa   :  { %v852_v43 = vld [vmem:[%s1374_s0 + $0x90] sm:$0xff]   ;;  %v853_v44 = vld [vmem:[%s1374_s0 + $0x48] sm:$0xff]   ;;  %v854_v45 = vld [vmem:[%s1374_s0 + $0x98] sm:$0xff]  }
   0xb   :  { %777 = vmatpush3.bf16.msra.mxu0 %v725_v16  ;;  %830 = vmatpush3.bf16.msra.mxu1 %v725_v16  ;;  %v77_v46 = vld [vmem:[%s1375_s2 + $0x10] sm:$0xff]  ;;  %v75_v48 = vld [vmem:[%s1375_s2] sm:$0xff]  ;;  %v78_v52 = vld [vmem:[%s1375_s2 + $0x18] sm:$0xff] }
   0xc   :  { %778 = vmatprep.subr.bf16.mxu0 %v726_v19  ;;  %826 = vmatprep.subr.bf16.mxu1 %v726_v19  ;;  %v97_v47 = vld [vmem:[%s1375_s2 + $0xb0] sm:$0xff]  ;;  %v95_v49 = vld [vmem:[%s1375_s2 + $0xa0] sm:$0xff]  ;;  %v98_v53 = vld [vmem:[%s1375_s2 + $0xb8] sm:$0xff] }
   0xd   :  { %v76_v58 = vld [vmem:[%s1375_s2 + $0x8] sm:$0xff]  ;;  %v81_v12 = vld [vmem:[%s1375_s2 + $0x30] sm:$0xff]  ;;  %v79_v15 = vld [vmem:[%s1375_s2 + $0x20] sm:$0xff] }
   0xe   :  { %v96_v59 = vld [vmem:[%s1375_s2 + $0xa8] sm:$0xff]  ;;  %v101_v13 = vld [vmem:[%s1375_s2 + $0xd0] sm:$0xff]  ;;  %v99_v16 = vld [vmem:[%s1375_s2 + $0xc0] sm:$0xff] }
   0xf   :  { %779 = vmatpush3.bf16.msra.mxu0 %v726_v19  ;;  %831 = vmatpush3.bf16.msra.mxu1 %v726_v19  ;;  %v82_v20 = vld [vmem:[%s1375_s2 + $0x38] sm:$0xff] }
  0x10   :  { %780 = vmatprep.subr.bf16.mxu0 %v727_v24  ;;  %827 = vmatprep.subr.bf16.mxu1 %v727_v24  ;;  %v102_v25 = vld [vmem:[%s1375_s2 + $0xd8] sm:$0xff] }
  0x13   :  { %781 = vmatpush3.bf16.msra.mxu0 %v727_v24  ;;  %832 = vmatpush3.bf16.msra.mxu1 %v727_v24 }
  0x14   :  { %782 = vmatprep.subr.bf16.mxu0 %v728_v27  ;;  %828 = vmatprep.subr.bf16.mxu1 %v728_v27 }
  0x17   :  { %783 = vmatpush3.bf16.msra.mxu0 %v728_v27  ;;  %833 = vmatpush3.bf16.msra.mxu1 %v728_v27 }
  0x1a   :  { %785 = vmatmul.mubr.msk.bf16.vlgmr.msra.gmra.mrb[0].mxu0 %vm245_vm0, %v837_v28  ;;  %805 = vmatmul.mubr.msk.bf16.vlgmr.msra.gmra.mrb[0].mxu1 %vm245_vm0, %v838_v29 }
  0x1b   :  { %788 = vmatprep.mubr.msk.bf16.mxu0 %vm245_vm0, %v839_v30  ;;  %808 = vmatprep.mubr.msk.bf16.mxu1 %vm245_vm0, %v840_v31  ;;  %v80_v30 = vld [vmem:[%s1375_s2 + $0x28] sm:$0xff] }
  0x1c   :  { %v100_v31 = vld [vmem:[%s1375_s2 + $0xc8] sm:$0xff] }
  0x22   :  { %789 = vmatmul.mubr.msk.bf16.gmra.mrb[4].mxu0 %vm245_vm0, %v841_v32  ;;  %809 = vmatmul.mubr.msk.bf16.gmra.mrb[4].mxu1 %vm245_vm0, %v842_v33 }
  0x23   :  { %792 = vmatprep.mubr.msk.bf16.mxu0 %vm245_vm0, %v843_v34  ;;  %812 = vmatprep.mubr.msk.bf16.mxu1 %vm245_vm0, %v844_v35 }
  0x2a   :  { %793 = vmatmul.mubr.msk.bf16.gmra.mrb[8].mxu0 %vm245_vm0, %v845_v36  ;;  %813 = vmatmul.mubr.msk.bf16.gmra.mrb[8].mxu1 %vm245_vm0, %v846_v37 }
  0x2b   :  { %796 = vmatprep.mubr.msk.bf16.mxu0 %vm245_vm0, %v847_v38  ;;  %816 = vmatprep.mubr.msk.bf16.mxu1 %vm245_vm0, %v848_v39 }
  0x32   :  { %797 = vmatmul.mubr.msk.bf16.gmra.mrb[12].mxu0 %vm245_vm0, %v849_v40  ;;  %817 = vmatmul.mubr.msk.bf16.gmra.mrb[12].mxu1 %vm245_vm0, %v850_v41 }
  0x33   :  { %800 = vmatprep.mubr.msk.bf16.mxu0 %vm245_vm0, %v851_v42  ;;  %820 = vmatprep.mubr.msk.bf16.mxu1 %vm245_vm0, %v852_v43 }
  0x3a   :  { %801 = vmatmul.mubr.msk.bf16.gmra.mrb[16].mxu0 %vm245_vm0, %v853_v44  ;;  %821 = vmatmul.mubr.msk.bf16.gmra.mrb[16].mxu1 %vm245_vm0, %v854_v45  ;;  %v85_v44 = vld [vmem:[%s1375_s2 + $0x50] sm:$0xff] }
  0x3b   :  { %v105_v45 = vld [vmem:[%s1375_s2 + $0xf0] sm:$0xff] }
  0xed   :  { %v786_v50 = vpop.f32.mrb[0].mxu0  ;;  %v806_v51 = vpop.f32.mrb[0].mxu1 }
  0xee   :  { %v349_v54 = vadd.f32 %v786_v50, %v77_v46  ;;  %v429_v55 = vadd.f32 %v806_v51, %v97_v47  ;;  %v340_v56 = vpop.f32.mrb[1].mxu0  ;;  %v420_v57 = vpop.f32.mrb[1].mxu1 }
  0xef   :  { %v341_v60 = vadd.f32 %v340_v56, %v75_v48  ;;  %v421_v61 = vadd.f32 %v420_v57, %v95_v49  ;;  %v787_v62 = vpop.f32.mrb[2].mxu0  ;;  %v807_v63 = vpop.f32.mrb[2].mxu1  ;;  %v83_v48 = vld [vmem:[%s1375_s2 + $0x40] sm:$0xff] }
  0xf0   :  { %v501_v0 = vmul.f32 0.5, %v349_v54  ;;  %v521_v1 = vmul.f32 0.5, %v429_v55  ;;  %v352_v2 = vadd.f32 %v787_v62, %v78_v52  ;;  %v432_v3 = vadd.f32 %v807_v63, %v98_v53  ;;  %v343_v4 = vpop.f32.mrb[3].mxu0  ;;  %v423_v5 = vpop.f32.mrb[3].mxu1 }
  0xf1   :  { %v499_v6 = vmul.f32 0.5, %v341_v60  ;;  %v519_v7 = vmul.f32 0.5, %v421_v61  ;;  %v344_v8 = vadd.f32 %v343_v4, %v76_v58  ;;  %v424_v9 = vadd.f32 %v423_v5, %v96_v59 }
  0xf2   :  { %855 = vtanh.f32 %v501_v0  ;;  %v502_v10 = vmul.f32 0.5, %v352_v2  ;;  %v522_v11 = vmul.f32 0.5, %v432_v3 }
  0xf3   :  { %857 = vtanh.f32 %v521_v1  ;;  %v500_v14 = vmul.f32 0.5, %v344_v8  ;;  %v520_v17 = vmul.f32 0.5, %v424_v9 }
  0xf4   :  { %859 = vtanh.f32 %v499_v6  ;;  %v103_v6 = vld [vmem:[%s1375_s2 + $0xe0] sm:$0xff] }
  0xf5   :  { %861 = vtanh.f32 %v519_v7  ;;  %v790_v18 = vpop.f32.mrb[4].mxu0  ;;  %v810_v19 = vpop.f32.mrb[4].mxu1 }
  0xf6   :  { %863 = vtanh.f32 %v502_v10  ;;  %v365_v21 = vadd.f32 %v790_v18, %v81_v12  ;;  %v445_v22 = vadd.f32 %v810_v19, %v101_v13  ;;  %v356_v23 = vpop.f32.mrb[5].mxu0  ;;  %v436_v24 = vpop.f32.mrb[5].mxu1  ;;  %v86_v13 = vld [vmem:[%s1375_s2 + $0x58] sm:$0xff] }
  0xf7   :  { %865 = vtanh.f32 %v522_v11  ;;  %v357_v26 = vadd.f32 %v356_v23, %v79_v15  ;;  %v437_v27 = vadd.f32 %v436_v24, %v99_v16  ;;  %v791_v28 = vpop.f32.mrb[6].mxu0  ;;  %v811_v29 = vpop.f32.mrb[6].mxu1  ;;  %v106_v18 = vld [vmem:[%s1375_s2 + $0xf8] sm:$0xff]  ;;  %v84_v23 = vld [vmem:[%s1375_s2 + $0x48] sm:$0xff] }
  0xf8   :  { %867 = vtanh.f32 %v500_v14  ;;  %v505_v32 = vmul.f32 0.5, %v365_v21  ;;  %v525_v33 = vmul.f32 0.5, %v445_v22  ;;  %v368_v34 = vadd.f32 %v791_v28, %v82_v20  ;;  %v359_v35 = vpop.f32.mrb[7].mxu0  ;;  %v439_v36 = vpop.f32.mrb[7].mxu1 }
  0xf9   :  { %869 = vtanh.f32 %v520_v17  ;;  %v503_v37 = vmul.f32 0.5, %v357_v26  ;;  %v523_v38 = vmul.f32 0.5, %v437_v27  ;;  %v448_v39 = vadd.f32 %v811_v29, %v102_v25 }
  0xfa   :  { %871 = vtanh.f32 %v505_v32  ;;  %v506_v40 = vmul.f32 0.5, %v368_v34  ;;  %v360_v41 = vadd.f32 %v359_v35, %v80_v30  ;;  %v440_v42 = vadd.f32 %v439_v36, %v100_v31 }
  0xfb   :  { %873 = vtanh.f32 %v525_v33  ;;  %v526_v43 = vmul.f32 0.5, %v448_v39 }
  0xfc   :  { %v856_v46 = vpop.eup %855  ;;  %875 = vtanh.f32 %v503_v37  ;;  %v504_v47 = vmul.f32 0.5, %v360_v41  ;;  %v524_v51 = vmul.f32 0.5, %v440_v42 }
  0xfd   :  { %v858_v49 = vpop.eup %857  ;;  %v581_v50 = vadd.f32 1.0, %v856_v46  ;;  %877 = vtanh.f32 %v523_v38  ;;  %v794_v52 = vpop.f32.mrb[8].mxu0 }
  0xfe   :  { %v814_v53 = vpop.f32.mrb[8].mxu1  ;;  %v860_v54 = vpop.eup %859  ;;  %v601_v55 = vadd.f32 1.0, %v858_v49  ;;  %879 = vtanh.f32 %v506_v40  ;;  %v381_v56 = vadd.f32 %v794_v52, %v85_v44  ;;  %v104_v40 = vld [vmem:[%s1375_s2 + $0xe8] sm:$0xff] }
  0xff   :  { %v461_v57 = vadd.f32 %v814_v53, %v105_v45  ;;  %v372_v58 = vpop.f32.mrb[9].mxu0  ;;  %v452_v59 = vpop.f32.mrb[9].mxu1  ;;  %v621_v61 = vmul.f32 0.5, %v581_v50  ;;  %v579_v62 = vadd.f32 1.0, %v860_v54  ;;  %881 = vtanh.f32 %v526_v43  ;;  %v109_v54 = vld [vmem:[%s1375_s2 + $0x110] sm:$0xff] }
 0x100   :  { %v862_v60 = vpop.eup %861  ;;  %v373_v63 = vadd.f32 %v372_v58, %v83_v48  ;;  %v795_v0 = vpop.f32.mrb[10].mxu0  ;;  %v641_v3 = vmul.f32 0.5, %v601_v55  ;;  %883 = vtanh.f32 %v504_v47  ;;  %v509_v5 = vmul.f32 0.5, %v381_v56  ;;  %v89_v47 = vld [vmem:[%s1375_s2 + $0x70] sm:$0xff] }
 0x101   :  { %v815_v1 = vpop.f32.mrb[10].mxu1  ;;  %v864_v2 = vpop.eup %863  ;;  %v599_v4 = vadd.f32 1.0, %v862_v60  ;;  %662 = vst.msk [vmem:[%s1376_s3 + $0x10] sm:$0xff] %vm659_vm1, %v621_v61  ;;  %v619_v10 = vmul.f32 0.5, %v579_v62  ;;  %885 = vtanh.f32 %v524_v51  ;;  %v529_v12 = vmul.f32 0.5, %v461_v57  ;;  %v87_v61 = vld [vmem:[%s1375_s2 + $0x60] sm:$0xff] }
 0x102   :  { %v375_v7 = vpop.f32.mrb[11].mxu0  ;;  %v1126_v8 = vpop.f32.mrb[11].mxu1  ;;  %v582_v11 = vadd.f32 1.0, %v864_v2  ;;  %682 = vst.msk [vmem:[%s1376_s3 + $0xb0] sm:$0xff] %vm659_vm1, %v641_v3  ;;  %887 = vtanh.f32 %v509_v5  ;;  %v507_v17 = vmul.f32 0.5, %v373_v63  ;;  %v453_v22 = vadd.f32 %v452_v59, %v103_v6 }
 0x103   :  { %v866_v9 = vpop.eup %865  ;;  %v639_v15 = vmul.f32 0.5, %v599_v4  ;;  %660 = vst.msk [vmem:[%s1376_s3] sm:$0xff] %vm659_vm1, %v619_v10  ;;  %889 = vtanh.f32 %v529_v12  ;;  %v384_v27 = vadd.f32 %v795_v0, %v86_v13  ;;  %v464_v32 = vadd.f32 %v815_v1, %v106_v18  ;;  %v107_v12 = vld [vmem:[%s1375_s2 + $0x100] sm:$0xff]  ;;  %v90_v13 = vld [vmem:[%s1375_s2 + $0x78] sm:$0xff] }
 0x104   :  { %v868_v14 = vpop.eup %867  ;;  %v602_v16 = vadd.f32 1.0, %v866_v9  ;;  %v622_v20 = vmul.f32 0.5, %v582_v11  ;;  %891 = vtanh.f32 %v507_v17  ;;  %v527_v31 = vmul.f32 0.5, %v453_v22 }
 0x105   :  { %v870_v19 = vpop.eup %869  ;;  %v580_v21 = vadd.f32 1.0, %v868_v14  ;;  %680 = vst.msk [vmem:[%s1376_s3 + $0xa0] sm:$0xff] %vm659_vm1, %v639_v15  ;;  %v798_v33 = vpop.f32.mrb[12].mxu0  ;;  %v510_v38 = vmul.f32 0.5, %v384_v27  ;;  %v376_v39 = vadd.f32 %v375_v7, %v84_v23  ;;  %v530_v46 = vmul.f32 0.5, %v464_v32  ;;  %v110_v14 = vld [vmem:[%s1375_s2 + $0x118] sm:$0xff] }
 0x106   :  { %v872_v24 = vpop.eup %871  ;;  %v642_v25 = vmul.f32 0.5, %v602_v16  ;;  %v600_v26 = vadd.f32 1.0, %v870_v19  ;;  %663 = vst.msk [vmem:[%s1376_s3 + $0x18] sm:$0xff] %vm659_vm1, %v622_v20  ;;  %v818_v34 = vpop.f32.mrb[12].mxu1  ;;  %893 = vtanh.f32 %v527_v31  ;;  %v456_v60 = vadd.f32 %v1126_v8, %v104_v40  ;;  %v88_v19 = vld [vmem:[%s1375_s2 + $0x68] sm:$0xff]  ;;  %v93_v32 = vld [vmem:[%s1375_s2 + $0x90] sm:$0xff] }
 0x107   :  { %v874_v28 = vpop.eup %873  ;;  %v620_v29 = vmul.f32 0.5, %v580_v21  ;;  %v585_v30 = vadd.f32 1.0, %v872_v24  ;;  %v388_v41 = vpop.f32.mrb[13].mxu0  ;;  %895 = vtanh.f32 %v510_v38  ;;  %v508_v53 = vmul.f32 0.5, %v376_v39 }
 0x108   :  { %v876_v35 = vpop.eup %875  ;;  %683 = vst.msk [vmem:[%s1376_s3 + $0xb8] sm:$0xff] %vm659_vm1, %v642_v25  ;;  %v640_v36 = vmul.f32 0.5, %v600_v26  ;;  %v605_v37 = vadd.f32 1.0, %v874_v28  ;;  %v1164_v42 = vpop.f32.mrb[13].mxu1  ;;  %897 = vtanh.f32 %v530_v46  ;;  %v397_v1 = vadd.f32 %v798_v33, %v89_v47  ;;  %v108_v26 = vld [vmem:[%s1375_s2 + $0x108] sm:$0xff] }
 0x109   :  { %v878_v43 = vpop.eup %877  ;;  %661 = vst.msk [vmem:[%s1376_s3 + $0x8] sm:$0xff] %vm659_vm1, %v620_v29  ;;  %v625_v44 = vmul.f32 0.5, %v585_v30  ;;  %v583_v45 = vadd.f32 1.0, %v876_v35  ;;  %v1173_v48 = vpop.f32.mrb[14].mxu0  ;;  %899 = vtanh.f32 %v508_v53  ;;  %v528_v5 = vmul.f32 0.5, %v456_v60 }
 0x10a   :  { %v1175_v49 = vpop.f32.mrb[14].mxu1  ;;  %v880_v50 = vpop.eup %879  ;;  %681 = vst.msk [vmem:[%s1376_s3 + $0xa8] sm:$0xff] %vm659_vm1, %v640_v36  ;;  %v645_v51 = vmul.f32 0.5, %v605_v37  ;;  %v603_v52 = vadd.f32 1.0, %v878_v43  ;;  %v477_v6 = vadd.f32 %v818_v34, %v109_v54  ;;  %v513_v10 = vmul.f32 0.5, %v397_v1 }
 0x10b   :  { %v1184_v55 = vpop.f32.mrb[15].mxu0  ;;  %v1186_v56 = vpop.f32.mrb[15].mxu1  ;;  %666 = vst.msk [vmem:[%s1376_s3 + $0x30] sm:$0xff] %vm659_vm1, %v625_v44  ;;  %v623_v58 = vmul.f32 0.5, %v583_v45  ;;  %v586_v59 = vadd.f32 1.0, %v880_v50  ;;  %v389_v11 = vadd.f32 %v388_v41, %v87_v61  ;;  %901 = vtanh.f32 %v528_v5  ;;  %v113_v50 = vld [vmem:[%s1375_s2 + $0x130] sm:$0xff] }
 0x10c   :  { %v882_v57 = vpop.eup %881  ;;  %686 = vst.msk [vmem:[%s1376_s3 + $0xd0] sm:$0xff] %vm659_vm1, %v645_v51  ;;  %v643_v63 = vmul.f32 0.5, %v603_v52  ;;  %v533_v18 = vmul.f32 0.5, %v477_v6  ;;  %903 = vtanh.f32 %v513_v10  ;;  %v469_v31 = vadd.f32 %v1164_v42, %v107_v12  ;;  %v94_v61 = vld [vmem:[%s1375_s2 + $0x98] sm:$0xff] }
 0x10d   :  { %v884_v62 = vpop.eup %883  ;;  %v606_v0 = vadd.f32 1.0, %v882_v57  ;;  %664 = vst.msk [vmem:[%s1376_s3 + $0x20] sm:$0xff] %vm659_vm1, %v623_v58  ;;  %v626_v3 = vmul.f32 0.5, %v586_v59  ;;  %v802_v20 = vpop.f32.mrb[16].mxu0  ;;  %v511_v25 = vmul.f32 0.5, %v389_v11  ;;  %v400_v36 = vadd.f32 %v1173_v48, %v90_v13 }
 0x10e   :  { %v886_v2 = vpop.eup %885  ;;  %v584_v4 = vadd.f32 1.0, %v884_v62  ;;  %684 = vst.msk [vmem:[%s1376_s3 + $0xc0] sm:$0xff] %vm659_vm1, %v643_v63  ;;  %v822_v21 = vpop.f32.mrb[16].mxu1  ;;  %905 = vtanh.f32 %v533_v18  ;;  %v480_v37 = vadd.f32 %v1175_v49, %v110_v14  ;;  %v531_v42 = vmul.f32 0.5, %v469_v31  ;;  %v112_v18 = vld [vmem:[%s1375_s2 + $0x128] sm:$0xff] }
 0x10f   :  { %v888_v7 = vpop.eup %887  ;;  %v646_v8 = vmul.f32 0.5, %v606_v0  ;;  %v604_v9 = vadd.f32 1.0, %v886_v2  ;;  %667 = vst.msk [vmem:[%s1376_s3 + $0x38] sm:$0xff] %vm659_vm1, %v626_v3  ;;  %v404_v27 = vpop.f32.mrb[17].mxu0  ;;  %907 = vtanh.f32 %v511_v25  ;;  %v392_v43 = vadd.f32 %v1184_v55, %v88_v19  ;;  %v91_v55 = vld [vmem:[%s1375_s2 + $0x80] sm:$0xff] }
 0x110   :  { %v890_v15 = vpop.eup %889  ;;  %v624_v16 = vmul.f32 0.5, %v584_v4  ;;  %v589_v17 = vadd.f32 1.0, %v888_v7  ;;  %v484_v28 = vpop.f32.mrb[17].mxu1  ;;  %v472_v44 = vadd.f32 %v1186_v56, %v108_v26  ;;  %v514_v47 = vmul.f32 0.5, %v400_v36  ;;  %v111_v56 = vld [vmem:[%s1375_s2 + $0x120] sm:$0xff]  ;;  %v114_v4 = vld [vmem:[%s1375_s2 + $0x138] sm:$0xff] }
 0x111   :  { %v892_v22 = vpop.eup %891  ;;  %687 = vst.msk [vmem:[%s1376_s3 + $0xd8] sm:$0xff] %vm659_vm1, %v646_v8  ;;  %v644_v23 = vmul.f32 0.5, %v604_v9  ;;  %v609_v24 = vadd.f32 1.0, %v890_v15  ;;  %v803_v33 = vpop.f32.mrb[18].mxu0  ;;  %v534_v48 = vmul.f32 0.5, %v480_v37  ;;  %v413_v49 = vadd.f32 %v802_v20, %v93_v32  ;;  %v92_v9 = vld [vmem:[%s1375_s2 + $0x88] sm:$0xff] }
 0x112   :  { %665 = vst.msk [vmem:[%s1376_s3 + $0x28] sm:$0xff] %vm659_vm1, %v624_v16  ;;  %v629_v29 = vmul.f32 0.5, %v589_v17  ;;  %v587_v30 = vadd.f32 1.0, %v892_v22  ;;  %v1239_v34 = vpop.f32.mrb[18].mxu1  ;;  %v1247_v38 = vpop.f32.mrb[19].mxu0  ;;  %909 = vtanh.f32 %v531_v42  ;;  %v512_v53 = vmul.f32 0.5, %v392_v43 }
 0x113   :  { %685 = vst.msk [vmem:[%s1376_s3 + $0xc8] sm:$0xff] %vm659_vm1, %v644_v23  ;;  %v649_v35 = vmul.f32 0.5, %v609_v24  ;;  %v1249_v39 = vpop.f32.mrb[19].mxu1  ;;  %v894_v40 = vpop.eup %893  ;;  %v532_v54 = vmul.f32 0.5, %v472_v44  ;;  %911 = vtanh.f32 %v514_v47  ;;  %v517_v60 = vmul.f32 0.5, %v413_v49 }
 0x114   :  { %670 = vst.msk [vmem:[%s1376_s3 + $0x50] sm:$0xff] %vm659_vm1, %v629_v29  ;;  %v627_v41 = vmul.f32 0.5, %v587_v30  ;;  %v896_v45 = vpop.eup %895  ;;  %v607_v46 = vadd.f32 1.0, %v894_v40  ;;  %913 = vtanh.f32 %v534_v48  ;;  %v493_v0 = vadd.f32 %v822_v21, %v113_v50 }
 0x115   :  { %690 = vst.msk [vmem:[%s1376_s3 + $0xf0] sm:$0xff] %vm659_vm1, %v649_v35  ;;  %v898_v51 = vpop.eup %897  ;;  %v590_v52 = vadd.f32 1.0, %v896_v45  ;;  %915 = vtanh.f32 %v512_v53  ;;  %v405_v2 = vadd.f32 %v404_v27, %v91_v55  ;;  %v485_v3 = vadd.f32 %v484_v28, %v111_v56 }
 0x116   :  { %668 = vst.msk [vmem:[%s1376_s3 + $0x40] sm:$0xff] %vm659_vm1, %v627_v41  ;;  %v900_v57 = vpop.eup %899  ;;  %v647_v58 = vmul.f32 0.5, %v607_v46  ;;  %v610_v59 = vadd.f32 1.0, %v898_v51  ;;  %917 = vtanh.f32 %v532_v54  ;;  %v537_v7 = vmul.f32 0.5, %v493_v0 }
 0x117   :  { %v630_v62 = vmul.f32 0.5, %v590_v52  ;;  %v588_v63 = vadd.f32 1.0, %v900_v57  ;;  %v902_v5 = vpop.eup %901  ;;  %v416_v8 = vadd.f32 %v803_v33, %v94_v61  ;;  %919 = vtanh.f32 %v517_v60 }
 0x118   :  { %688 = vst.msk [vmem:[%s1376_s3 + $0xe0] sm:$0xff] %vm659_vm1, %v647_v58  ;;  %v650_v1 = vmul.f32 0.5, %v610_v59  ;;  %v904_v10 = vpop.eup %903  ;;  %v608_v11 = vadd.f32 1.0, %v902_v5  ;;  %v515_v12 = vmul.f32 0.5, %v405_v2  ;;  %v535_v13 = vmul.f32 0.5, %v485_v3 }
 0x119   :  { %671 = vst.msk [vmem:[%s1376_s3 + $0x58] sm:$0xff] %vm659_vm1, %v630_v62  ;;  %v628_v6 = vmul.f32 0.5, %v588_v63  ;;  %v906_v14 = vpop.eup %905  ;;  %v593_v15 = vadd.f32 1.0, %v904_v10  ;;  %921 = vtanh.f32 %v537_v7  ;;  %v518_v16 = vmul.f32 0.5, %v416_v8 }
 0x11a   :  { %691 = vst.msk [vmem:[%s1376_s3 + $0xf8] sm:$0xff] %vm659_vm1, %v650_v1  ;;  %v496_v17 = vadd.f32 %v1239_v34, %v114_v4  ;;  %v908_v19 = vpop.eup %907  ;;  %v648_v20 = vmul.f32 0.5, %v608_v11  ;;  %v613_v21 = vadd.f32 1.0, %v906_v14  ;;  %923 = vtanh.f32 %v515_v12 }
 0x11b   :  { %669 = vst.msk [vmem:[%s1376_s3 + $0x48] sm:$0xff] %vm659_vm1, %v628_v6  ;;  %v408_v22 = vadd.f32 %v1247_v38, %v92_v9  ;;  %v633_v23 = vmul.f32 0.5, %v593_v15  ;;  %v591_v24 = vadd.f32 1.0, %v908_v19  ;;  %925 = vtanh.f32 %v535_v13 }
 0x11c   :  { %v538_v25 = vmul.f32 0.5, %v496_v17  ;;  %689 = vst.msk [vmem:[%s1376_s3 + $0xe8] sm:$0xff] %vm659_vm1, %v648_v20  ;;  %v653_v26 = vmul.f32 0.5, %v613_v21  ;;  %927 = vtanh.f32 %v518_v16  ;;  %v488_v28 = vadd.f32 %v1249_v39, %v112_v18  ;;  %v910_v29 = vpop.eup %909 }
 0x11d   :  { %v516_v27 = vmul.f32 0.5, %v408_v22  ;;  %674 = vst.msk [vmem:[%s1376_s3 + $0x70] sm:$0xff] %vm659_vm1, %v633_v23  ;;  %v631_v30 = vmul.f32 0.5, %v591_v24  ;;  %v912_v31 = vpop.eup %911  ;;  %v611_v32 = vadd.f32 1.0, %v910_v29 }
 0x11e   :  { %929 = vtanh.f32 %v538_v25  ;;  %694 = vst.msk [vmem:[%s1376_s3 + $0x110] sm:$0xff] %vm659_vm1, %v653_v26  ;;  %v536_v33 = vmul.f32 0.5, %v488_v28  ;;  %v914_v34 = vpop.eup %913  ;;  %v594_v35 = vadd.f32 1.0, %v912_v31 }
 0x11f   :  { %931 = vtanh.f32 %v516_v27  ;;  %672 = vst.msk [vmem:[%s1376_s3 + $0x60] sm:$0xff] %vm659_vm1, %v631_v30  ;;  %v916_v36 = vpop.eup %915  ;;  %v651_v37 = vmul.f32 0.5, %v611_v32  ;;  %v614_v38 = vadd.f32 1.0, %v914_v34 }
 0x120   :  { %933 = vtanh.f32 %v536_v33  ;;  %v918_v39 = vpop.eup %917  ;;  %v634_v40 = vmul.f32 0.5, %v594_v35  ;;  %v592_v41 = vadd.f32 1.0, %v916_v36 }
 0x121   :  { %v920_v42 = vpop.eup %919  ;;  %692 = vst.msk [vmem:[%s1376_s3 + $0x100] sm:$0xff] %vm659_vm1, %v651_v37  ;;  %v654_v43 = vmul.f32 0.5, %v614_v38  ;;  %v612_v44 = vadd.f32 1.0, %v918_v39 }
 0x122   :  { %675 = vst.msk [vmem:[%s1376_s3 + $0x78] sm:$0xff] %vm659_vm1, %v634_v40  ;;  %v632_v46 = vmul.f32 0.5, %v592_v41  ;;  %v597_v47 = vadd.f32 1.0, %v920_v42 }
 0x123   :  { %v922_v45 = vpop.eup %921  ;;  %695 = vst.msk [vmem:[%s1376_s3 + $0x118] sm:$0xff] %vm659_vm1, %v654_v43  ;;  %v652_v49 = vmul.f32 0.5, %v612_v44 }
 0x124   :  { %v924_v48 = vpop.eup %923  ;;  %v617_v50 = vadd.f32 1.0, %v922_v45  ;;  %673 = vst.msk [vmem:[%s1376_s3 + $0x68] sm:$0xff] %vm659_vm1, %v632_v46  ;;  %v637_v52 = vmul.f32 0.5, %v597_v47 }
 0x125   :  { %v926_v51 = vpop.eup %925  ;;  %v595_v53 = vadd.f32 1.0, %v924_v48  ;;  %693 = vst.msk [vmem:[%s1376_s3 + $0x108] sm:$0xff] %vm659_vm1, %v652_v49 }
 0x126   :  { %v928_v54 = vpop.eup %927  ;;  %v657_v55 = vmul.f32 0.5, %v617_v50  ;;  %v615_v56 = vadd.f32 1.0, %v926_v51  ;;  %678 = vst.msk [vmem:[%s1376_s3 + $0x90] sm:$0xff] %vm659_vm1, %v637_v52 }
 0x127   :  { %v635_v58 = vmul.f32 0.5, %v595_v53  ;;  %v598_v59 = vadd.f32 1.0, %v928_v54 }
 0x128   :  { %v930_v57 = vpop.eup %929  ;;  %698 = vst.msk [vmem:[%s1376_s3 + $0x130] sm:$0xff] %vm659_vm1, %v657_v55  ;;  %v655_v61 = vmul.f32 0.5, %v615_v56 }
 0x129   :  { %v932_v60 = vpop.eup %931  ;;  %v618_v62 = vadd.f32 1.0, %v930_v57  ;;  %676 = vst.msk [vmem:[%s1376_s3 + $0x80] sm:$0xff] %vm659_vm1, %v635_v58  ;;  %v638_v63 = vmul.f32 0.5, %v598_v59 }
 0x12a   :  { %v596_v0 = vadd.f32 1.0, %v932_v60  ;;  %v934_v1 = vpop.eup %933  ;;  %696 = vst.msk [vmem:[%s1376_s3 + $0x120] sm:$0xff] %vm659_vm1, %v655_v61 }
 0x12b   :  { %v658_v2 = vmul.f32 0.5, %v618_v62  ;;  %679 = vst.msk [vmem:[%s1376_s3 + $0x98] sm:$0xff] %vm659_vm1, %v638_v63  ;;  %v616_v4 = vadd.f32 1.0, %v934_v1 }
 0x12c   :  { %v636_v3 = vmul.f32 0.5, %v596_v0 }
 0x12d   :  { %699 = vst.msk [vmem:[%s1376_s3 + $0x138] sm:$0xff] %vm659_vm1, %v658_v2  ;;  %v656_v5 = vmul.f32 0.5, %v616_v4 }
 0x12e   :  { %677 = vst.msk [vmem:[%s1376_s3 + $0x88] sm:$0xff] %vm659_vm1, %v636_v3 }
 0x12f   :  { %697 = vst.msk [vmem:[%s1376_s3 + $0x128] sm:$0xff] %vm659_vm1, %v656_v5 }

</bundles_post_ra>
